<compile_context>
chip_gen: v7x
topology: tpu7x:2x2x1
jax: 0.10.0
libtpu: 0.0.40
codegen_flags: <defaults>
</compile_context>

<pallas_src>
import jax
import jax.numpy as jnp
from jax.experimental import pallas as pl
from jax.experimental.pallas import tpu as pltpu

LANE = 128


def _pad_to(n, mult):
    return ((n + mult - 1) // mult) * mult


def gridworld_kernel(x_ref, w1_ref, b1_ref, w2_ref, b2_ref, out_ref):
    # x_ref:  (T_blk, B, C)   — unpadded tiny feature dim (C ~ 4)
    # w1_ref: (C, Hp)           b1_ref: (1, Hp)
    # w2_ref: (Hp, Op)          b2_ref: (1, Op)
    # out_ref:(T_blk, B, Op)  — lane-dense (Op = 128) output tile
    t_blk, b, c = x_ref.shape
    hp = w1_ref.shape[1]
    op = w2_ref.shape[1]

    x = x_ref[...]          # (T_blk, B, C)
    w1 = w1_ref[...]        # (C, Hp)
    b1 = b1_ref[...]        # (1, Hp)

    # fc1 + ReLU as C unrolled VPU FMAs (avoids lane-padding x and a
    # nearly-all-zero MXU matmul).  Zero-padded hidden columns stay exactly 0.
    h = jnp.broadcast_to(b1.reshape(1, 1, hp), (t_blk, b, hp))
    for ci in range(c):  # static unroll, C is tiny
        h = h + x[:, :, ci:ci + 1] * w1[ci:ci + 1, :].reshape(1, 1, hp)
    h = jnp.maximum(h, 0.0)

    # fc2: one MXU pass over the whole (T_blk*B, Hp) slab.
    h2 = h.reshape(t_blk * b, hp)
    logits = jnp.dot(h2, w2_ref[...],
                     preferred_element_type=jnp.float32) + b2_ref[...]
    logits = logits.reshape(t_blk, b, op)

    # softmax over dim=0 of each step's (B, O) batch  ->  axis=1 of the tile.
    m = jnp.max(logits, axis=1, keepdims=True)
    e = jnp.exp(logits - m)
    denom = jnp.sum(e, axis=1, keepdims=True)
    out_ref[...] = e / denom


def prepare_params(w1, b1, w2, b2):
    """Pad parameters once (e.g. after each optimizer update), NOT per forward.

    w1: (C, H) = fc1.weight.T     b1: (H,)  = fc1.bias
    w2: (H, O) = fc2.weight.T     b2: (O,)  = fc2.bias
    Hidden and output dims are zero-padded to 128 lanes (exact for the math).
    """
    c, h = w1.shape
    o = w2.shape[1]
    hp = _pad_to(h, LANE)
    op = _pad_to(o, LANE)
    w1p = jnp.zeros((c, hp), jnp.float32).at[:, :h].set(w1.astype(jnp.float32))
    b1p = jnp.zeros((1, hp), jnp.float32).at[:, :h].set(
        b1.reshape(1, h).astype(jnp.float32))
    w2p = jnp.zeros((hp, op), jnp.float32).at[:h, :o].set(w2.astype(jnp.float32))
    b2p = jnp.zeros((1, op), jnp.float32).at[:, :o].set(
        b2.reshape(1, o).astype(jnp.float32))
    return w1p, b1p, w2p, b2p


def gridworld_forward(x, padded_params, output_size, *, t_blk=None,
                      return_padded=False):
    """Batched-over-steps forward.

    x: (T, B, C) — T independent per-step batches; softmax is over each step's
       batch axis, exactly like calling the PyTorch module T times on (B, C).
    padded_params: output of prepare_params (padded once, reused every call).
    Returns (T, B, output_size) float32 (or the padded (T, B, 128) tile if
    return_padded=True, to keep the hot path free of the slice copy).
    """
    w1p, b1p, w2p, b2p = padded_params
    T, B, C = x.shape
    Hp = w1p.shape[1]
    Op = w2p.shape[1]

    if t_blk is None:
        # Two "parallel" grid blocks: both v7x TensorCores get work, while on
        # single-TC chips (v5e/v6e) the one extra grid step is ~0.35 us.
        t_blk = T // 2 if (T % 2 == 0 and T >= 2) else T
    assert T % t_blk == 0, "T must be divisible by t_blk"

    x = x.astype(jnp.float32)

    cost = pl.CostEstimate(
        flops=2 * T * B * (C * Hp + Hp * Op),
        transcendentals=T * B * Op,
        bytes_accessed=4 * (x.size + w1p.size + b1p.size + w2p.size
                            + b2p.size + T * B * Op),
    )

    out_padded = pl.pallas_call(
        gridworld_kernel,
        out_shape=jax.ShapeDtypeStruct((T, B, Op), jnp.float32),
        grid_spec=pltpu.PrefetchScalarGridSpec(
            num_scalar_prefetch=0,
            grid=(T // t_blk,),
            in_specs=[
                # Multi-step activation block; last dims (B, C) equal the full
                # array dims, so no (8,128) padding of x is needed.
                pl.BlockSpec((t_blk, B, C), lambda t: (t, 0, 0)),
                # Weights/biases: constant block index -> fetched once, stay
                # resident in VMEM across the whole grid.
                pl.BlockSpec((C, Hp), lambda t: (0, 0)),
                pl.BlockSpec((1, Hp), lambda t: (0, 0)),
                pl.BlockSpec((Hp, Op), lambda t: (0, 0)),
                pl.BlockSpec((1, Op), lambda t: (0, 0)),
            ],
            out_specs=pl.BlockSpec((t_blk, B, Op), lambda t: (t, 0, 0)),
        ),
        compiler_params=pltpu.CompilerParams(
            dimension_semantics=("parallel",),
        ),
        cost_estimate=cost,
    )(x, w1p, b1p, w2p, b2p)

    if return_padded:
        return out_padded
    return out_padded[:, :, :output_size]


def reference_forward(x, w1, b1, w2, b2):
    # Pure-JAX reference: for each step t, fc1 -> relu -> fc2 -> softmax over
    # that step's batch axis (dim=0 of the per-step (B, C) input).
    h = jnp.maximum(jnp.einsum("tbc,ch->tbh", x, w1) + b1, 0.0)
    logits = jnp.einsum("tbh,ho->tbo", h, w2) + b2
    return jax.nn.softmax(logits, axis=1)


if __name__ == "__main__":
    # Shapes consistent with the module:
    #   input_channels = 4, hidden = 64 (fixed by module), output_size = 8,
    #   per-step batch = 8, T = 16 steps/environments amortized per call.
    T, B, C, H, O = 16, 8, 4, 64, 8

    key = jax.random.PRNGKey(0)
    kx, k1, k2, k3, k4 = jax.random.split(key, 5)

    x = jax.random.normal(kx, (T, B, C), dtype=jnp.float32)

    # Deterministic synthetic parameters (nn.Linear(C,64), nn.Linear(64,O)).
    w1 = jax.random.normal(k1, (C, H), dtype=jnp.float32) * 0.1   # fc1.weight.T
    b1 = jax.random.normal(k2, (H,), dtype=jnp.float32) * 0.1     # fc1.bias
    w2 = jax.random.normal(k3, (H, O), dtype=jnp.float32) * 0.1   # fc2.weight.T
    b2 = jax.random.normal(k4, (O,), dtype=jnp.float32) * 0.1     # fc2.bias

    # Pad parameters ONCE; reuse across every forward in the RL loop.
    params = prepare_params(w1, b1, w2, b2)

    out = gridworld_forward(x, params, O)
    jax.block_until_ready(out)

    ref = reference_forward(x, w1, b1, w2, b2)
    assert out.shape == (T, B, O)
    assert jnp.allclose(out, ref, atol=1e-5, rtol=1e-5), \
        float(jnp.max(jnp.abs(out - ref)))

    print("KERNEL_OK")
</pallas_src>

<mosaic_0001>
module attributes {stable_mosaic.version = 11 : i64} {
  func.func @gridworld_kernel(%arg0: i32, %arg1: memref<8x8x4xf32, #tpu.memory_space<vmem>>, %arg2: memref<4x128xf32, #tpu.memory_space<vmem>>, %arg3: memref<1x128xf32, #tpu.memory_space<vmem>>, %arg4: memref<128x128xf32, #tpu.memory_space<vmem>>, %arg5: memref<1x128xf32, #tpu.memory_space<vmem>>, %arg6: memref<8x8x128xf32, #tpu.memory_space<vmem>>) attributes {dimension_semantics = [#tpu.dimension_semantics<parallel>], iteration_bounds = array<i64: 2>, scalar_prefetch = 0 : i64, scratch_operands = 0 : i64, tpu.core_type = #tpu.core_type<tc>, window_params = [{transform_indices = @transform_0, window_bounds = array<i64: 8, 8, 4>}, {pipeline_mode = #tpu.pipeline_mode<synchronous>, transform_indices = @transform_1, window_bounds = array<i64: 4, 128>}, {pipeline_mode = #tpu.pipeline_mode<synchronous>, transform_indices = @transform_2, window_bounds = array<i64: 1, 128>}, {pipeline_mode = #tpu.pipeline_mode<synchronous>, transform_indices = @transform_3, window_bounds = array<i64: 128, 128>}, {pipeline_mode = #tpu.pipeline_mode<synchronous>, transform_indices = @transform_4, window_bounds = array<i64: 1, 128>}, {transform_indices = @transform_5, window_bounds = array<i64: 8, 8, 128>}]} {
    %c0 = arith.constant 0 : index
    %c0_0 = arith.constant 0 : index
    %c0_1 = arith.constant 0 : index
    %0 = vector.load %arg1[%c0, %c0_0, %c0_1] : memref<8x8x4xf32, #tpu.memory_space<vmem>>, vector<8x8x4xf32>
    %c0_2 = arith.constant 0 : index
    %c0_3 = arith.constant 0 : index
    %1 = vector.load %arg2[%c0_2, %c0_3] : memref<4x128xf32, #tpu.memory_space<vmem>>, vector<4x128xf32>
    %c0_4 = arith.constant 0 : index
    %c0_5 = arith.constant 0 : index
    %2 = vector.load %arg3[%c0_4, %c0_5] : memref<1x128xf32, #tpu.memory_space<vmem>>, vector<1x128xf32>
    %3 = vector.shape_cast %2 : vector<1x128xf32> to vector<1x1x128xf32>
    %4 = vector.shape_cast %3 : vector<1x1x128xf32> to vector<1x1x128xf32>
    %5 = vector.broadcast %4 : vector<1x1x128xf32> to vector<8x8x128xf32>
    %6 = vector.extract_strided_slice %0 {offsets = [0, 0, 0], sizes = [8, 8, 1], strides = [1, 1, 1]} : vector<8x8x4xf32> to vector<8x8x1xf32>
    %7 = vector.extract_strided_slice %1 {offsets = [0, 0], sizes = [1, 128], strides = [1, 1]} : vector<4x128xf32> to vector<1x128xf32>
    %8 = vector.shape_cast %7 : vector<1x128xf32> to vector<1x1x128xf32>
    %9 = vector.broadcast %6 : vector<8x8x1xf32> to vector<8x8x128xf32>
    %10 = vector.broadcast %8 : vector<1x1x128xf32> to vector<8x8x128xf32>
    %11 = arith.mulf %9, %10 : vector<8x8x128xf32>
    %12 = arith.addf %5, %11 : vector<8x8x128xf32>
    %13 = vector.extract_strided_slice %0 {offsets = [0, 0, 1], sizes = [8, 8, 1], strides = [1, 1, 1]} : vector<8x8x4xf32> to vector<8x8x1xf32>
    %14 = vector.extract_strided_slice %1 {offsets = [1, 0], sizes = [1, 128], strides = [1, 1]} : vector<4x128xf32> to vector<1x128xf32>
    %15 = vector.shape_cast %14 : vector<1x128xf32> to vector<1x1x128xf32>
    %16 = vector.broadcast %13 : vector<8x8x1xf32> to vector<8x8x128xf32>
    %17 = vector.broadcast %15 : vector<1x1x128xf32> to vector<8x8x128xf32>
    %18 = arith.mulf %16, %17 : vector<8x8x128xf32>
    %19 = arith.addf %12, %18 : vector<8x8x128xf32>
    %20 = vector.extract_strided_slice %0 {offsets = [0, 0, 2], sizes = [8, 8, 1], strides = [1, 1, 1]} : vector<8x8x4xf32> to vector<8x8x1xf32>
    %21 = vector.extract_strided_slice %1 {offsets = [2, 0], sizes = [1, 128], strides = [1, 1]} : vector<4x128xf32> to vector<1x128xf32>
    %22 = vector.shape_cast %21 : vector<1x128xf32> to vector<1x1x128xf32>
    %23 = vector.broadcast %20 : vector<8x8x1xf32> to vector<8x8x128xf32>
    %24 = vector.broadcast %22 : vector<1x1x128xf32> to vector<8x8x128xf32>
    %25 = arith.mulf %23, %24 : vector<8x8x128xf32>
    %26 = arith.addf %19, %25 : vector<8x8x128xf32>
    %27 = vector.extract_strided_slice %0 {offsets = [0, 0, 3], sizes = [8, 8, 1], strides = [1, 1, 1]} : vector<8x8x4xf32> to vector<8x8x1xf32>
    %28 = vector.extract_strided_slice %1 {offsets = [3, 0], sizes = [1, 128], strides = [1, 1]} : vector<4x128xf32> to vector<1x128xf32>
    %29 = vector.shape_cast %28 : vector<1x128xf32> to vector<1x1x128xf32>
    %30 = vector.broadcast %27 : vector<8x8x1xf32> to vector<8x8x128xf32>
    %31 = vector.broadcast %29 : vector<1x1x128xf32> to vector<8x8x128xf32>
    %32 = arith.mulf %30, %31 : vector<8x8x128xf32>
    %33 = arith.addf %26, %32 : vector<8x8x128xf32>
    %cst = arith.constant 0.000000e+00 : f32
    %34 = vector.broadcast %cst : f32 to vector<8x8x128xf32>
    %35 = arith.maximumf %33, %34 : vector<8x8x128xf32>
    %36 = vector.shape_cast %35 : vector<8x8x128xf32> to vector<64x128xf32>
    %c0_6 = arith.constant 0 : index
    %c0_7 = arith.constant 0 : index
    %37 = vector.load %arg4[%c0_6, %c0_7] : memref<128x128xf32, #tpu.memory_space<vmem>>, vector<128x128xf32>
    %cst_8 = arith.constant dense<0.000000e+00> : vector<64x128xf32>
    %38 = tpu.matmul %36, %37, %cst_8 {dimension_numbers = #tpu.dot_dimension_numbers<[1], [0], [0], [1], [0, 0, 1, 1], [], []>} : vector<64x128xf32>, vector<128x128xf32>, vector<64x128xf32> -> vector<64x128xf32>
    %c0_9 = arith.constant 0 : index
    %c0_10 = arith.constant 0 : index
    %39 = vector.load %arg5[%c0_9, %c0_10] : memref<1x128xf32, #tpu.memory_space<vmem>>, vector<1x128xf32>
    %40 = vector.broadcast %39 : vector<1x128xf32> to vector<64x128xf32>
    %41 = arith.addf %38, %40 : vector<64x128xf32>
    %42 = vector.shape_cast %41 : vector<64x128xf32> to vector<8x8x128xf32>
    %cst_11 = arith.constant dense<0xFF800000> : vector<8x128xf32>
    %43 = vector.multi_reduction <maximumf>, %42, %cst_11 [1] : vector<8x8x128xf32> to vector<8x128xf32>
    %44 = vector.shape_cast %43 : vector<8x128xf32> to vector<8x1x128xf32>
    %45 = vector.broadcast %44 : vector<8x1x128xf32> to vector<8x8x128xf32>
    %46 = arith.subf %42, %45 : vector<8x8x128xf32>
    %47 = math.exp %46 : vector<8x8x128xf32>
    %cst_12 = arith.constant dense<0.000000e+00> : vector<8x128xf32>
    %48 = vector.multi_reduction <add>, %47, %cst_12 [1] : vector<8x8x128xf32> to vector<8x128xf32>
    %49 = vector.shape_cast %48 : vector<8x128xf32> to vector<8x1x128xf32>
    %50 = vector.broadcast %49 : vector<8x1x128xf32> to vector<8x8x128xf32>
    %51 = arith.divf %47, %50 : vector<8x8x128xf32>
    %c0_13 = arith.constant 0 : index
    %c0_14 = arith.constant 0 : index
    %c0_15 = arith.constant 0 : index
    %52 = vector.load %arg6[%c0_13, %c0_14, %c0_15] : memref<8x8x128xf32, #tpu.memory_space<vmem>>, vector<8x8x128xf32>
    tpu.vector_store %arg6[%c0_13, %c0_14, %c0_15], %51 {strides = array<i32>} : memref<8x8x128xf32, #tpu.memory_space<vmem>>, vector<8x8x128xf32>,
    return
  }
  func.func @transform_0(%arg0: i32) -> (i32, i32, i32) {
    %c0_i32 = arith.constant 0 : i32
    %c0_i32_0 = arith.constant 0 : i32
    %c0_i32_1 = arith.constant 0 : i32
    return %arg0, %c0_i32, %c0_i32_0 : i32, i32, i32
  }
  func.func @transform_1(%arg0: i32) -> (i32, i32) {
    %c0_i32 = arith.constant 0 : i32
    %c0_i32_0 = arith.constant 0 : i32
    %c0_i32_1 = arith.constant 0 : i32
    return %c0_i32, %c0_i32_0 : i32, i32
  }
  func.func @transform_2(%arg0: i32) -> (i32, i32) {
    %c0_i32 = arith.constant 0 : i32
    %c0_i32_0 = arith.constant 0 : i32
    %c0_i32_1 = arith.constant 0 : i32
    return %c0_i32, %c0_i32_0 : i32, i32
  }
  func.func @transform_3(%arg0: i32) -> (i32, i32) {
    %c0_i32 = arith.constant 0 : i32
    %c0_i32_0 = arith.constant 0 : i32
    %c0_i32_1 = arith.constant 0 : i32
    return %c0_i32, %c0_i32_0 : i32, i32
  }
  func.func @transform_4(%arg0: i32) -> (i32, i32) {
    %c0_i32 = arith.constant 0 : i32
    %c0_i32_0 = arith.constant 0 : i32
    %c0_i32_1 = arith.constant 0 : i32
    return %c0_i32, %c0_i32_0 : i32, i32
  }
  func.func @transform_5(%arg0: i32) -> (i32, i32, i32) {
    %c0_i32 = arith.constant 0 : i32
    %c0_i32_0 = arith.constant 0 : i32
    %c0_i32_1 = arith.constant 0 : i32
    return %arg0, %c0_i32, %c0_i32_0 : i32, i32, i32
  }
}

</mosaic_0001>

<bundles_post_ra>
// kernel: tpu_custom_call.1
= control target key start
LH: loop header
LB: loop body
LE: loop exit
PB: predicated region body
PF: predicated region fallthrough
CT: control target
= control target key end

     0   :  { %10 = vsyncpa [#allocation3], 0  ;;  %s1467_s0 = inlined_call_operand.vmem [shape: f32[16,8,4], index: 0, kind: input, shape index: {}]   ;;  %s1468_s1 = inlined_call_operand.vmem [shape: f32[4,128], index: 1, kind: input, shape index: {}]   ;;  %s1469_s2 = inlined_call_operand.vmem [shape: f32[1,128], index: 2, kind: input, shape index: {}]   ;;  %s1470_s3 = inlined_call_operand.vmem [shape: f32[128,128], index: 3, kind: input, shape index: {}]   ;;  %s1471_s4 = inlined_call_operand.vmem [shape: f32[1,128], index: 4, kind: input, shape index: {}]   ;;  %s1472_s5 = inlined_call_operand.hbm [shape: f32[16,8,128], index: 5, kind: output, shape index: {}]  }
   0x1   :  { %12 = vsyncpa [#allocation3 + $0x1], 0  ;;  %s1139_s18 = smov 0   ;;  %s1141_s19 = smov 0  }
   0x2   :  { %s1143_s20 = smov 0   ;;  %s1145_s21 = smov 0  }
   0x3 LB: > { %s1160_s22 = sadd.s32 4294967295, %s1100_s21   ;;  %s814_s23 = sadd.s32 4294967294, %s1100_s21   ;;  %s1100_s21 = sphi %s1145_s21, %s1478_s21   ;;  %s1096_s20 = sphi %s1143_s20, %s1477_s20   ;;  %s1092_s19 = sphi %s1141_s19, %s1476_s19   ;;  %s1088_s18 = sphi %s1139_s18, %s1475_s18  }
   0x4   : > { %s1164_s24 = sadd.s32 1, %s1100_s21   ;;  %s135_s25 = sadd.s32 1, %s1096_s20 }
   0x5   : > { %s132_s26 = ssub.s32 %s1100_s21, %s1164_s24  ;;  %p145_p0 = scmp.ne.s32.totalorder %s1096_s20, %s1092_s19 }
   0x6   : > { %p133_p1 = scmp.eq.s32.totalorder %s132_s26, 0  ;;  %p146_p2 = scmp.eq.s32.totalorder %s1160_s22, 1 }
   0x7   : > { %p151_p3 = scmp.ne.s32.totalorder %s1092_s19, %s1088_s18  ;;  %p152_p4 = scmp.eq.s32.totalorder %s814_s23, 1 }
   0x8   : > { %s1175_s27 = scalar_select %p133_p1, %s1096_s20, %s135_s25  }
   0x9   : > { %p1177_p5 = por %p146_p2, %p145_p0  ;;  %p1181_p6 = por %p152_p4, %p151_p3 }
   0xa   : > { %p817_p7 = scmp.ge.s32.totalorder %s1100_s21, 1  ;;  %p191_p8 = scmp.lt.s32.totalorder %s1100_s21, 3 }
   0xc   : > { %p192_p9 = pnand %p817_p7, %p191_p8 }
   0xd   : > { %s819_s30 = sshll.u32 (!%p192_p9), %s1160_s22, 3  ;;  %v1102_v0 = vmov (!%p192_p9), 0   ;;  %v1103_v6 = vmov (!%p192_p9), 1   ;;  %v466_v9 = vld [vmem:[%s1470_s3] sm:$0xff] (!%p192_p9)  ;;  %v467_v10 = vld [vmem:[%s1470_s3 + $0x8] sm:$0xff] (!%p192_p9)  ;;  %v1104_v12 = vmov (!%p192_p9), 2   ;;  %v282_v47 = vlaneseq (!%p192_p9) }
   0xe   : > { %195 = sbr.rel (%p192_p9) target bundleno = 526 (0x20e), region = 40  ;;  %991 = vset.pattern.permute.xlu1 (!%p192_p9), %v1102_v0  ;;  %990 = vset.pattern.permute.xlu0 (!%p192_p9), %v1102_v0  ;;  %p220_p10 = scmp.lt.s32.totalorder (!%p192_p9), %s819_s30, 15  ;;  %v897_v11 = vpack.c.bf16 (!%p192_p9), %v467_v10, %v466_v9  ;;  %v468_v13 = vld [vmem:[%s1470_s3 + $0x10] sm:$0xff] (!%p192_p9)  ;;  %v469_v14 = vld [vmem:[%s1470_s3 + $0x18] sm:$0xff] (!%p192_p9)  ;;  %v470_v16 = vld [vmem:[%s1470_s3 + $0x20] sm:$0xff] (!%p192_p9)  ;;  %v1105_v29 = vmov (!%p192_p9), 3  }
   0xf   : > { %v901_v15 = vpack.c.bf16 (!%p192_p9), %v469_v14, %v468_v13  ;;  %v471_v17 = vld [vmem:[%s1470_s3 + $0x28] sm:$0xff] (!%p192_p9)  ;;  %v472_v20 = vld [vmem:[%s1470_s3 + $0x30] sm:$0xff] (!%p192_p9)  ;;  %v473_v21 = vld [vmem:[%s1470_s3 + $0x38] sm:$0xff] (!%p192_p9)  ;;  %v283_v50 = vshrl.u32 (!%p192_p9), %v282_v47, 7  ;;  %s216_s16 = sand.u32 (!%p192_p9), 1, %s1092_s19   ;;  %s828_s25 = sshll.u32 (!%p192_p9), %s1160_s22, 10 }
  0x10   : > { %898 = vmatprep.subr.bf16.mxu0 (!%p192_p9), %v897_v11  ;;  %929 = vmatprep.subr.bf16.mxu1 (!%p192_p9), %v897_v11  ;;  %v905_v18 = vpack.c.bf16 (!%p192_p9), %v471_v17, %v470_v16  ;;  %v909_v22 = vpack.c.bf16 (!%p192_p9), %v473_v21, %v472_v20  ;;  %v474_v23 = vld [vmem:[%s1470_s3 + $0x40] sm:$0xff] (!%p192_p9)  ;;  %v475_v24 = vld [vmem:[%s1470_s3 + $0x48] sm:$0xff] (!%p192_p9)  ;;  %v476_v26 = vld [vmem:[%s1470_s3 + $0x50] sm:$0xff] (!%p192_p9)  ;;  %s818_s17 = sshll.u32 (!%p192_p9), %s216_s16, 6  ;;  %s1419_s7 = scalar_lea.hbm (!%p192_p9), %s1472_s5, %s828_s25 }
  0x11   : > { %900 = vmatpush3.bf16.msra.mxu0 (!%p192_p9), %v897_v11  ;;  %937 = vmatpush3.bf16.msra.mxu1 (!%p192_p9), %v897_v11  ;;  %v913_v25 = vpack.c.bf16 (!%p192_p9), %v475_v24, %v474_v23  ;;  %v477_v27 = vld [vmem:[%s1470_s3 + $0x58] sm:$0xff] (!%p192_p9)  ;;  %v478_v30 = vld [vmem:[%s1470_s3 + $0x60] sm:$0xff] (!%p192_p9)  ;;  %v479_v31 = vld [vmem:[%s1470_s3 + $0x68] sm:$0xff] (!%p192_p9)  ;;  %v284_v53 = vsub.s32 (!%p192_p9), 0, %v283_v50  ;;  %v336_v57 = vsub.s32 (!%p192_p9), 1, %v283_v50  ;;  %v388_v60 = vsub.s32 (!%p192_p9), 2, %v283_v50 }
  0x12   : > { %902 = vmatprep.subr.bf16.mxu0 (!%p192_p9), %v901_v15  ;;  %930 = vmatprep.subr.bf16.mxu1 (!%p192_p9), %v901_v15  ;;  %v917_v28 = vpack.c.bf16 (!%p192_p9), %v477_v27, %v476_v26  ;;  %v921_v32 = vpack.c.bf16 (!%p192_p9), %v479_v31, %v478_v30  ;;  %v480_v33 = vld [vmem:[%s1470_s3 + $0x70] sm:$0xff] (!%p192_p9)  ;;  %v481_v34 = vld [vmem:[%s1470_s3 + $0x78] sm:$0xff] (!%p192_p9)  ;;  %v234_v54 = vld [vmem:[%s1468_s1] sm:$0xf] (!%p192_p9)  ;;  %v440_v62 = vsub.s32 (!%p192_p9), 3, %v283_v50  ;;  %s1405_s23 = scalar_lea.vmem (!%p192_p9), [#allocation2], %s818_s17 }
  0x13   : > { %v925_v35 = vpack.c.bf16 (!%p192_p9), %v481_v34, %v480_v33  ;;  %v1318_v56 = vrot.slane (!%p192_p9), %v234_v54, %v284_v53  ;;  %v1321_v63 = vrot.slane (!%p192_p9), %v234_v54, %v336_v57  ;;  %s752_s26 = sshll.u32 (!%p192_p9), %s1405_s23, 4  ;;  %s1426_s8 = scalar_lea.sflag (!%p192_p9), [#allocation3], %s216_s16  ;;  %s1421_s26 = int_to_ptr.vmem [resolvable:$true] %s752_s26 }
  0x14   : > { %s1038_s22 = scalar_lea.vmem (!%p192_p9), %s1421_s26, 1024  ;;  %s1106_s10 = smov (!%p192_p9), [#allocation2]  }
  0x15   : > { %s1480_s30 = smov (!%p220_p10, %s819_s30), 15  ;;  %904 = vmatpush3.bf16.msra.mxu0 %v901_v15  ;;  %938 = vmatpush3.bf16.msra.mxu1 %v901_v15  ;;  %p1039_p11 = scmp.ne.s32.totalorder %s1421_s26, %s1038_s22 }
  0x16   : > { %s820_s6 = sshll.u32 %s1480_s30, 3  ;;  %906 = vmatprep.subr.bf16.mxu0 %v905_v18  ;;  %931 = vmatprep.subr.bf16.mxu1 %v905_v18 }
  0x17   : > { %s1191_s9 = scalar_lea.vmem %s1467_s0, %s820_s6  ;;  %p1040_p12 = pnand %p1039_p11, %p1177_p5 }
  0x18   : > { %v1194_v1 = vld [vmem:[%s1191_s9 + $0x8] sm:$0xff]  ;;  %v1197_v2 = vld [vmem:[%s1191_s9] sm:$0xff]  ;;  %v1210_v5 = vld [vmem:[%s1191_s9 + $0x30] sm:$0xff] }
  0x19   : > { %249 = vperm.xlu1 %991, %v1194_v1   ;;  %244 = vperm.xlu0 %990, %v1197_v2   ;;  %v1202_v3 = vld [vmem:[%s1191_s9 + $0x28] sm:$0xff]  ;;  %v1205_v4 = vld [vmem:[%s1191_s9 + $0x20] sm:$0xff]  ;;  %v1216_v7 = vld [vmem:[%s1191_s9 + $0x18] sm:$0xff]  ;;  %p1041_p13 = pneg %p1040_p12 }
  0x1a   : > { %v1221_v8 = vld [vmem:[%s1191_s9 + $0x10] sm:$0xff]  ;;  %v1251_v19 = vld [vmem:[%s1191_s9 + $0x38] sm:$0xff]  ;;  %908 = vmatpush3.bf16.msra.mxu0 %v905_v18  ;;  %939 = vmatpush3.bf16.msra.mxu1 %v905_v18  ;;  %s1042_s9 = sshll.u32 %s1106_s10, 4  ;;  %s1043_s9 = int_to_ptr.vmem [resolvable:$false] %s1042_s9 }
  0x1b   : > { %910 = vmatprep.subr.bf16.mxu0 %v909_v22  ;;  %932 = vmatprep.subr.bf16.mxu1 %v909_v22  ;;  %s1044_s11 = scalar_lea.vmem %s1043_s9, 2048  ;;  %p1045_p0 = scmp.lt.s32.totalorder %s1421_s26, %s1043_s9 }
  0x1c   : > { %p1046_p1 = scmp.lt.s32.totalorder %s1044_s11, %s1038_s22 }
  0x1d   : > { %269 = vperm.xlu1 %991, %v1202_v3   ;;  %264 = vperm.xlu0 %990, %v1205_v4  }
  0x1e   : > { %912 = vmatpush3.bf16.msra.mxu0 %v909_v22  ;;  %940 = vmatpush3.bf16.msra.mxu1 %v909_v22  ;;  %p1047_p2 = por %p1046_p1, %p1045_p0 }
  0x1f   : > { %914 = vmatprep.subr.bf16.mxu0 %v913_v25  ;;  %933 = vmatprep.subr.bf16.mxu1 %v913_v25 }
  0x20   : > { %p1048_p3 = pnand %p1047_p2, %p1041_p13 }
  0x21   : > { %992 = vset.pattern.permute.xlu1 %v1103_v6  ;;  %274 = vperm.xlu0 %990, %v1210_v5  }
  0x22   : > { %319 = vperm.xlu1 %992, %v1205_v4   ;;  %916 = vmatpush3.bf16.msra.mxu0 %v913_v25 }
  0x23   : > { %941 = vmatpush3.bf16.msra.mxu1 %v913_v25  ;;  %918 = vmatprep.subr.bf16.mxu0 %v917_v28 }
  0x24   : > { %934 = vmatprep.subr.bf16.mxu1 %v917_v28 }
  0x25   : > { %259 = vperm.xlu0 %990, %v1216_v7  }
  0x26   : > { %307 = vperm.xlu1 %992, %v1194_v1   ;;  %920 = vmatpush3.bf16.msra.mxu0 %v917_v28 }
  0x27   : > { %942 = vmatpush3.bf16.msra.mxu1 %v917_v28  ;;  %922 = vmatprep.subr.bf16.mxu0 %v921_v32 }
  0x28   : > { %935 = vmatprep.subr.bf16.mxu1 %v921_v32 }
  0x29   : > { %995 = vset.pattern.permute.xlu0 %v1103_v6 }
  0x2a   : > { %993 = vset.pattern.permute.xlu1 %v1102_v0  ;;  %303 = vperm.xlu0 %995, %v1197_v2  }
  0x2b   : > { %254 = vperm.xlu1 %993, %v1221_v8   ;;  %924 = vmatpush3.bf16.msra.mxu0 %v921_v32 }
  0x2c   : > { %943 = vmatpush3.bf16.msra.mxu1 %v921_v32  ;;  %926 = vmatprep.subr.bf16.mxu0 %v925_v35 }
  0x2d   : > { %936 = vmatprep.subr.bf16.mxu1 %v925_v35 }
  0x2e   : > { %323 = vperm.xlu0 %995, %v1202_v3  }
  0x2f   : > { %994 = vset.pattern.permute.xlu1 %v1104_v12  ;;  %928 = vmatpush3.bf16.msra.mxu0 %v925_v35 }
  0x30   : > { %355 = vperm.xlu1 %994, %v1197_v2   ;;  %944 = vmatpush3.bf16.msra.mxu1 %v925_v35 }
  0x32   : > { %327 = vperm.xlu0 %995, %v1210_v5  }
  0x34   : > { %371 = vperm.xlu1 %994, %v1205_v4  }
  0x36   : > { %315 = vperm.xlu0 %995, %v1216_v7  }
  0x38   : > { %996 = vset.pattern.permute.xlu1 %v1102_v0 }
  0x39   : > { %279 = vperm.xlu1 %996, %v1251_v19  }
  0x3a   : > { %1000 = vset.pattern.permute.xlu0 %v1104_v12 }
  0x3b   : > { %359 = vperm.xlu0 %1000, %v1194_v1  }
  0x3d   : > { %997 = vset.pattern.permute.xlu1 %v1104_v12 }
  0x3e   : > { %375 = vperm.xlu1 %997, %v1202_v3  }
  0x3f   : > { %379 = vperm.xlu0 %1000, %v1210_v5  }
  0x42   : > { %998 = vset.pattern.permute.xlu1 %v1103_v6 }
  0x43   : > { %311 = vperm.xlu1 %998, %v1221_v8   ;;  %1004 = vset.pattern.permute.xlu0 %v1105_v29 }
  0x44   : > { %411 = vperm.xlu0 %1004, %v1194_v1   ;;  %v1328_v1 = vld [vmem:[%s1469_s2] ss:$0 sm:$0xff] }
  0x47   : > { %999 = vset.pattern.permute.xlu1 %v1105_v29 }
  0x48   : > { %407 = vperm.xlu1 %999, %v1197_v2   ;;  %415 = vperm.xlu0 %1004, %v1221_v8  }
  0x4c   : > { %423 = vperm.xlu1 %999, %v1205_v4   ;;  %435 = vperm.xlu0 %1004, %v1251_v19  }
  0x50   : > { %1001 = vset.pattern.permute.xlu1 %v1103_v6 }
  0x51   : > { %331 = vperm.xlu1 %1001, %v1251_v19  }
  0x55   : > { %1002 = vset.pattern.permute.xlu1 %v1105_v29 }
  0x56   : > { %427 = vperm.xlu1 %1002, %v1202_v3  }
  0x5a   : > { %1003 = vset.pattern.permute.xlu1 %v1104_v12 }
  0x5b   : > { %363 = vperm.xlu1 %1003, %v1221_v8  }
  0x5f   : > { %367 = vperm.xlu1 %1003, %v1216_v7  }
  0x63   : > { %383 = vperm.xlu1 %1003, %v1251_v19  }
  0x67   : > { %1005 = vset.pattern.permute.xlu1 %v1105_v29 }
  0x68   : > { %431 = vperm.xlu1 %1005, %v1210_v5   ;;  %v1333_v5 = vrot.slane %v234_v54, %v388_v60 }
  0x6c   : > { %419 = vperm.xlu1 %1005, %v1216_v7   ;;  %v1336_v7 = vrot.slane %v234_v54, %v440_v62 }
  0x98   : > { %v250_v36 = vpop.permute.xlu1 %249  ;;  %v245_v37 = vpop.permute.xlu0 %244 }
  0x99   : > { %v286_v59 = vmul.f32 %v1318_v56, %v245_v37  ;;  %v287_v2 = vmul.f32 %v1318_v56, %v250_v36 }
  0x9b   : > { %v294_v3 = vadd.f32 %v1328_v1, %v286_v59  ;;  %v295_v10 = vadd.f32 %v1328_v1, %v287_v2 }
  0x9c   : > { %v270_v38 = vpop.permute.xlu1 %269  ;;  %v265_v39 = vpop.permute.xlu0 %264 }
  0x9d   : > { %v290_v8 = vmul.f32 %v1318_v56, %v265_v39  ;;  %v291_v32 = vmul.f32 %v1318_v56, %v270_v38 }
  0x9f   : > { %v298_v17 = vadd.f32 %v1328_v1, %v290_v8  ;;  %v299_v37 = vadd.f32 %v1328_v1, %v291_v32 }
  0xa0   : > { %v1305_v40 = vpop.permute.xlu0 %274 }
  0xa1   : > { %v320_v41 = vpop.permute.xlu1 %319 }
  0xa2   : > { %v342_v18 = vmul.f32 %v1321_v63, %v320_v41 }
  0xa4   : > { %v1307_v42 = vpop.permute.xlu0 %259  ;;  %v350_v25 = vadd.f32 %v342_v18, %v298_v17 }
  0xa5   : > { %v308_v43 = vpop.permute.xlu1 %307 }
  0xa6   : > { %v339_v6 = vmul.f32 %v1321_v63, %v308_v43 }
  0xa8   : > { %v347_v15 = vadd.f32 %v339_v6, %v295_v10 }
  0xa9   : > { %v304_v44 = vpop.permute.xlu0 %303 }
  0xaa   : > { %v255_v45 = vpop.permute.xlu1 %254  ;;  %v338_v4 = vmul.f32 %v1321_v63, %v304_v44 }
  0xab   : > { %v288_v43 = vmul.f32 %v1318_v56, %v255_v45 }
  0xac   : > { %v346_v13 = vadd.f32 %v338_v4, %v294_v3 }
  0xad   : > { %v324_v46 = vpop.permute.xlu0 %323 }
  0xae   : > { %v343_v34 = vmul.f32 %v1321_v63, %v324_v46  ;;  %v296_v46 = vadd.f32 %v1328_v1, %v288_v43 }
  0xaf   : > { %v356_v48 = vpop.permute.xlu1 %355 }
  0xb0   : > { %v390_v14 = vmul.f32 %v1333_v5, %v356_v48  ;;  %v351_v41 = vadd.f32 %v343_v34, %v299_v37 }
  0xb1   : > { %v1309_v49 = vpop.permute.xlu0 %327 }
  0xb2   : > { %v398_v23 = vadd.f32 %v390_v14, %v346_v13  ;;  %v344_v10 = vmul.f32 %v1321_v63, %v1309_v49 }
  0xb3   : > { %v372_v51 = vpop.permute.xlu1 %371 }
  0xb4   : > { %v394_v21 = vmul.f32 %v1333_v5, %v372_v51 }
  0xb5   : > { %v1311_v52 = vpop.permute.xlu0 %315 }
  0xb6   : > { %v402_v30 = vadd.f32 %v394_v21, %v350_v25 }
  0xb8   : > { %v1316_v55 = vpop.permute.xlu1 %279 }
  0xb9   : > { %v293_v45 = vmul.f32 %v1318_v56, %v1316_v55 }
  0xba   : > { %v360_v58 = vpop.permute.xlu0 %359 }
  0xbb   : > { %v391_v11 = vmul.f32 %v1333_v5, %v360_v58  ;;  %v301_v4 = vadd.f32 %v1328_v1, %v293_v45 }
  0xbd   : > { %v376_v61 = vpop.permute.xlu1 %375  ;;  %v399_v19 = vadd.f32 %v391_v11, %v347_v15 }
  0xbe   : > { %v1323_v0 = vpop.permute.xlu0 %379  ;;  %v395_v39 = vmul.f32 %v1333_v5, %v376_v61  ;;  %v292_v61 = vmul.f32 %v1318_v56, %v1305_v40 }
  0xbf   : > { %v396_v13 = vmul.f32 %v1333_v5, %v1323_v0 }
  0xc0   : > { %v403_v47 = vadd.f32 %v395_v39, %v351_v41  ;;  %v300_v8 = vadd.f32 %v1328_v1, %v292_v61 }
  0xc2   : > { %v312_v9 = vpop.permute.xlu1 %311  ;;  %v352_v17 = vadd.f32 %v344_v10, %v300_v8 }
  0xc3   : > { %v412_v12 = vpop.permute.xlu0 %411  ;;  %v340_v38 = vmul.f32 %v1321_v63, %v312_v9  ;;  %v289_v9 = vmul.f32 %v1318_v56, %v1307_v42  ;;  %v341_v42 = vmul.f32 %v1321_v63, %v1311_v52  ;;  %v1382_v52 = vld [vmem:[%s1471_s4] ss:$0 sm:$0xff] }
  0xc4   : > { %v443_v16 = vmul.f32 %v1336_v7, %v412_v12  ;;  %v404_v49 = vadd.f32 %v396_v13, %v352_v17 }
  0xc5   : > { %v348_v57 = vadd.f32 %v340_v38, %v296_v46 }
  0xc6   : > { %v451_v24 = vadd.f32 %v443_v16, %v399_v19  ;;  %v297_v16 = vadd.f32 %v1328_v1, %v289_v9 }
  0xc7   : > { %v408_v20 = vpop.permute.xlu1 %407  ;;  %v416_v51 = vpop.permute.xlu0 %415 }
  0xc8   : > { %v442_v22 = vmul.f32 %v1336_v7, %v408_v20  ;;  %v459_v31 = vmax.f32 %v451_v24, 0.0  ;;  %v444_v59 = vmul.f32 %v1336_v7, %v416_v51  ;;  %v349_v21 = vadd.f32 %v341_v42, %v297_v16 }
  0xca   : > { %v450_v26 = vadd.f32 %v442_v22, %v398_v23 }
  0xcb   : > { %v424_v27 = vpop.permute.xlu1 %423  ;;  %v436_v11 = vpop.permute.xlu0 %435 }
  0xcc   : > { %v446_v28 = vmul.f32 %v1336_v7, %v424_v27  ;;  %v458_v29 = vmax.f32 %v450_v26, 0.0  ;;  %v449_v15 = vmul.f32 %v1336_v7, %v436_v11 }
  0xce   : > { %885 = vmatprep.mubr.f32.mxu0 %v458_v29  ;;  %v454_v33 = vadd.f32 %v446_v28, %v402_v30 }
  0xcf   : > { %886 = vmatmul.mubr.f32.vlgmr.msra.gmra.mrb[0].mxu0 %v459_v31 }
  0xd0   : > { %v332_v35 = vpop.permute.xlu1 %331  ;;  %v462_v36 = vmax.f32 %v454_v33, 0.0 }
  0xd1   : > { %v345_v2 = vmul.f32 %v1321_v63, %v332_v35 }
  0xd2   : > { %891 = vmatprep.mubr.f32.mxu1 %v462_v36 }
  0xd3   : > { %v353_v12 = vadd.f32 %v345_v2, %v301_v4 }
  0xd5   : > { %v428_v44 = vpop.permute.xlu1 %427 }
  0xd6   : > { %v447_v48 = vmul.f32 %v1336_v7, %v428_v44 }
  0xd8   : > { %v455_v50 = vadd.f32 %v447_v48, %v403_v47 }
  0xda   : > { %v463_v53 = vmax.f32 %v455_v50, 0.0  ;;  %v364_v54 = vpop.permute.xlu1 %363 }
  0xdb   : > { %v392_v58 = vmul.f32 %v1333_v5, %v364_v54 }
  0xdc   : > { %892 = vmatmul.mubr.f32.vlgmr.msra.gmra.mrb[0].mxu1 %v463_v53 }
  0xdd   : > { %v400_v60 = vadd.f32 %v392_v58, %v348_v57 }
  0xde   : > { %v368_v62 = vpop.permute.xlu1 %367 }
  0xdf   : > { %v452_v3 = vadd.f32 %v444_v59, %v400_v60  ;;  %v393_v18 = vmul.f32 %v1333_v5, %v368_v62 }
  0xe1   : > { %v460_v6 = vmax.f32 %v452_v3, 0.0  ;;  %v401_v0 = vadd.f32 %v393_v18, %v349_v21 }
  0xe2   : > { %v384_v55 = vpop.permute.xlu1 %383 }
  0xe3   : > { %v397_v40 = vmul.f32 %v1333_v5, %v384_v55  ;;  %888 = vmatprep.mubr.f32.mxu0 %v460_v6 }
  0xe5   : > { %v405_v14 = vadd.f32 %v397_v40, %v353_v12 }
  0xe7   : > { %v432_v56 = vpop.permute.xlu1 %431  ;;  %v457_v20 = vadd.f32 %v449_v15, %v405_v14 }
  0xe8   : > { %v448_v19 = vmul.f32 %v1336_v7, %v432_v56 }
  0xe9   : > { %v465_v26 = vmax.f32 %v457_v20, 0.0 }
  0xea   : > { %v456_v22 = vadd.f32 %v448_v19, %v404_v49 }
  0xeb   : > { %v420_v23 = vpop.permute.xlu1 %419 }
  0xec   : > { %v464_v24 = vmax.f32 %v456_v22, 0.0  ;;  %v445_v25 = vmul.f32 %v1336_v7, %v420_v23 }
  0xee   : > { %v453_v1 = vadd.f32 %v445_v25, %v401_v0  ;;  %894 = vmatprep.mubr.f32.mxu1 %v464_v24 }
  0xef   : > { %895 = vmatmul.mubr.f32.gmra.mrb[2].mxu1 %v465_v26 }
  0xf0   : > { %v461_v27 = vmax.f32 %v453_v1, 0.0 }
  0xf2   : > { %889 = vmatmul.mubr.f32.gmra.mrb[2].mxu0 %v461_v27 }
 0x1a2   : > { %v887_v63 = vpop.f32.mrb[0].mxu0 }
 0x1a3   : > { %v561_v5 = vadd.f32 %v887_v63, %v1382_v52  ;;  %v555_v28 = vpop.f32.mrb[1].mxu0 }
 0x1a4   : > { %v556_v29 = vadd.f32 %v1382_v52, %v555_v28 }
 0x1a5   : > { %v600_v30 = vrot.slane %v561_v5, 4 }
 0x1a6   : > { %v594_v31 = vrot.slane %v556_v29, 4 }
 0x1a7   : > { %v601_v7 = vmax.f32 %v561_v5, %v600_v30 }
 0x1a8   : > { %v595_v32 = vmax.f32 %v556_v29, %v594_v31 }
 0x1a9   : > { %v602_v33 = vrot.slane %v601_v7, 2 }
 0x1aa   : > { %v596_v34 = vrot.slane %v595_v32, 2 }
 0x1ab   : > { %v603_v35 = vmax.f32 %v601_v7, %v602_v33 }
 0x1ac   : > { %v597_v36 = vmax.f32 %v595_v32, %v596_v34 }
 0x1ad   : > { %v604_v37 = vrot.slane %v603_v35, 1 }
 0x1ae   : > { %v598_v39 = vrot.slane %v597_v36, 1 }
 0x1af   : > { %v605_v41 = vmax.f32 %v603_v35, %v604_v37  ;;  %v893_v43 = vpop.f32.mrb[0].mxu1 }
 0x1b0   : > { %v599_v44 = vmax.f32 %v597_v36, %v598_v39  ;;  %v581_v47 = vadd.f32 %v893_v43, %v1382_v52  ;;  %v575_v48 = vpop.f32.mrb[1].mxu1 }
 0x1b1   : > { %v643_v38 = vsub.f32 %v561_v5, %v605_v41  ;;  %v576_v50 = vadd.f32 %v1382_v52, %v575_v48 }
 0x1b2   : > { %v642_v51 = vsub.f32 %v556_v29, %v599_v44  ;;  %v624_v46 = vrot.slane %v581_v47, 4 }
 0x1b3   : > { %v652_v53 = vmul.f32 1.442695, %v643_v38  ;;  %v618_v54 = vrot.slane %v576_v50, 4 }
 0x1b4   : > { %v650_v57 = vmul.f32 1.442695, %v642_v51  ;;  %v625_v58 = vmax.f32 %v581_v47, %v624_v46 }
 0x1b5   : > { %1006 = vpow2.f32 %v652_v53  ;;  %v619_v59 = vmax.f32 %v576_v50, %v618_v54 }
 0x1b6   : > { %1008 = vpow2.f32 %v650_v57  ;;  %v626_v45 = vrot.slane %v625_v58, 2 }
 0x1b7   : > { %v620_v60 = vrot.slane %v619_v59, 2 }
 0x1b8   : > { %v627_v61 = vmax.f32 %v625_v58, %v626_v45 }
 0x1b9   : > { %v621_v62 = vmax.f32 %v619_v59, %v620_v60 }
 0x1ba   : > { %v628_v2 = vrot.slane %v627_v61, 1 }
 0x1bb   : > { %v622_v3 = vrot.slane %v621_v62, 1 }
 0x1bc   : > { %v629_v4 = vmax.f32 %v627_v61, %v628_v2 }
 0x1bd   : > { %v623_v6 = vmax.f32 %v621_v62, %v622_v3 }
 0x1be   : > { %v647_v8 = vsub.f32 %v581_v47, %v629_v4 }
 0x1bf   : > { %v1388_v9 = vpop.eup %1006  ;;  %v646_v10 = vsub.f32 %v576_v50, %v623_v6 }
 0x1c0   : > { %v1390_v55 = vpop.eup %1008  ;;  %v672_v11 = vrot.slane %v1388_v9, 4  ;;  %v660_v12 = vmul.f32 1.442695, %v647_v8 }
 0x1c1   : > { %v666_v40 = vrot.slane %v1390_v55, 4  ;;  %v658_v13 = vmul.f32 1.442695, %v646_v10 }
 0x1c2   : > { %v673_v14 = vadd.f32 %v1388_v9, %v672_v11  ;;  %1010 = vpow2.f32 %v660_v12  ;;  %v896_v15 = vpop.f32.mrb[2].mxu1 }
 0x1c3   : > { %v667_v16 = vadd.f32 %v1390_v55, %v666_v40  ;;  %1012 = vpow2.f32 %v658_v13  ;;  %v591_v17 = vadd.f32 %v896_v15, %v1382_v52  ;;  %v585_v42 = vpop.f32.mrb[3].mxu1 }
 0x1c4   : > { %v674_v56 = vrot.slane %v673_v14, 2  ;;  %v586_v49 = vadd.f32 %v1382_v52, %v585_v42 }
 0x1c5   : > { %v668_v18 = vrot.slane %v667_v16, 2  ;;  %v636_v19 = vrot.slane %v591_v17, 4  ;;  %v890_v20 = vpop.f32.mrb[2].mxu0 }
 0x1c6   : > { %v675_v21 = vadd.f32 %v674_v56, %v673_v14  ;;  %v630_v22 = vrot.slane %v586_v49, 4  ;;  %v571_v23 = vadd.f32 %v890_v20, %v1382_v52  ;;  %v565_v0 = vpop.f32.mrb[3].mxu0 }
 0x1c7   : > { %v669_v24 = vadd.f32 %v668_v18, %v667_v16  ;;  %v637_v25 = vmax.f32 %v591_v17, %v636_v19  ;;  %v566_v26 = vadd.f32 %v1382_v52, %v565_v0 }
 0x1c8   : > { %v676_v1 = vrot.slane %v675_v21, 1  ;;  %v631_v27 = vmax.f32 %v586_v49, %v630_v22  ;;  %v612_v63 = vrot.slane %v571_v23, 4 }
 0x1c9   : > { %v670_v5 = vrot.slane %v669_v24, 1  ;;  %v638_v28 = vrot.slane %v637_v25, 2  ;;  %v606_v29 = vrot.slane %v566_v26, 4 }
 0x1ca   : > { %v677_v30 = vadd.f32 %v676_v1, %v675_v21  ;;  %v632_v31 = vrot.slane %v631_v27, 2  ;;  %v613_v7 = vmax.f32 %v571_v23, %v612_v63 }
 0x1cb   : > { %v671_v32 = vadd.f32 %v670_v5, %v669_v24  ;;  %v639_v33 = vmax.f32 %v637_v25, %v638_v28  ;;  %v607_v34 = vmax.f32 %v566_v26, %v606_v29 }
 0x1cc   : > { %v1011_v35 = vpop.eup %1010  ;;  %1014 = vrcp.f32 %v677_v30  ;;  %v633_v36 = vmax.f32 %v631_v27, %v632_v31  ;;  %v614_v37 = vrot.slane %v613_v7, 2 }
 0x1cd   : > { %v1013_v39 = vpop.eup %1012  ;;  %1016 = vrcp.f32 %v671_v32  ;;  %v696_v52 = vrot.slane %v1011_v35, 4  ;;  %v640_v41 = vrot.slane %v639_v33, 1  ;;  %v608_v43 = vrot.slane %v607_v34, 2 }
 0x1ce   : > { %v690_v44 = vrot.slane %v1013_v39, 4  ;;  %v634_v47 = vrot.slane %v633_v36, 1  ;;  %v615_v48 = vmax.f32 %v613_v7, %v614_v37 }
 0x1cf   : > { %v697_v38 = vadd.f32 %v1011_v35, %v696_v52  ;;  %v641_v50 = vmax.f32 %v639_v33, %v640_v41  ;;  %v609_v51 = vmax.f32 %v607_v34, %v608_v43 }
 0x1d0   : > { %v691_v46 = vadd.f32 %v1013_v39, %v690_v44  ;;  %v635_v53 = vmax.f32 %v633_v36, %v634_v47  ;;  %v616_v54 = vrot.slane %v615_v48, 1 }
 0x1d1   : > { %v698_v57 = vrot.slane %v697_v38, 2  ;;  %v649_v58 = vsub.f32 %v591_v17, %v641_v50  ;;  %v610_v59 = vrot.slane %v609_v51, 1 }
 0x1d2   : > { %v692_v45 = vrot.slane %v691_v46, 2  ;;  %v648_v60 = vsub.f32 %v586_v49, %v635_v53  ;;  %v617_v61 = vmax.f32 %v615_v48, %v616_v54 }
 0x1d3   : > { %v699_v62 = vadd.f32 %v698_v57, %v697_v38  ;;  %v664_v2 = vmul.f32 1.442695, %v649_v58  ;;  %v611_v3 = vmax.f32 %v609_v51, %v610_v59 }
 0x1d4   : > { %v693_v4 = vadd.f32 %v692_v45, %v691_v46  ;;  %v662_v6 = vmul.f32 1.442695, %v648_v60  ;;  %v645_v8 = vsub.f32 %v571_v23, %v617_v61 }
 0x1d5   : > { %v700_v10 = vrot.slane %v699_v62, 1  ;;  %1018 = vpow2.f32 %v664_v2  ;;  %v644_v11 = vsub.f32 %v566_v26, %v611_v3 }
 0x1d6   : > { %v1015_v12 = vpop.eup %1014  ;;  %v694_v40 = vrot.slane %v693_v4, 1  ;;  %1020 = vpow2.f32 %v662_v6  ;;  %v656_v13 = vmul.f32 1.442695, %v645_v8 }
 0x1d7   : > { %v1017_v14 = vpop.eup %1016  ;;  %v717_v15 = vmul.f32 %v1015_v12, %v1388_v9  ;;  %v701_v16 = vadd.f32 %v700_v10, %v699_v62  ;;  %v654_v17 = vmul.f32 1.442695, %v644_v11 }
 0x1d8   : > { %v715_v42 = vmul.f32 %v1017_v14, %v1390_v55  ;;  %v695_v56 = vadd.f32 %v694_v40, %v693_v4  ;;  %1022 = vpow2.f32 %v656_v13 }
 0x1d9   : > { %731 = vst [vmem:[%s1405_s23 + $0x8] sm:$0xff] %v717_v15  ;;  %1024 = vrcp.f32 %v701_v16 }
 0x1da   : > { %730 = vst [vmem:[%s1405_s23] sm:$0xff] %v715_v42  ;;  %1026 = vrcp.f32 %v695_v56 }
 0x1db   : > { %1028 = vpow2.f32 %v654_v17 }
 0x1df   : > { %v1019_v49 = vpop.eup %1018 }
 0x1e0   : > { %v1021_v18 = vpop.eup %1020  ;;  %v708_v19 = vrot.slane %v1019_v49, 4 }
 0x1e1   : > { %v702_v9 = vrot.slane %v1021_v18, 4 }
 0x1e2   : > { %v1023_v20 = vpop.eup %1022  ;;  %v709_v21 = vadd.f32 %v1019_v49, %v708_v19 }
 0x1e3   : > { %v1025_v55 = vpop.eup %1024  ;;  %v703_v22 = vadd.f32 %v1021_v18, %v702_v9  ;;  %v684_v23 = vrot.slane %v1023_v20, 4 }
 0x1e4   : > { %v1027_v0 = vpop.eup %1026  ;;  %v725_v24 = vmul.f32 %v1025_v55, %v1011_v35  ;;  %v710_v25 = vrot.slane %v709_v21, 2 }
 0x1e5   : > { %v1029_v26 = vpop.eup %1028  ;;  %v723_v1 = vmul.f32 %v1027_v0, %v1013_v39  ;;  %v704_v27 = vrot.slane %v703_v22, 2  ;;  %v685_v63 = vadd.f32 %v1023_v20, %v684_v23 }
 0x1e6   : > { %735 = vst [vmem:[%s1405_s23 + $0x28] sm:$0xff] %v725_v24  ;;  %v711_v5 = vadd.f32 %v710_v25, %v709_v21  ;;  %v678_v28 = vrot.slane %v1029_v26, 4 }
 0x1e7   : > { %734 = vst [vmem:[%s1405_s23 + $0x20] sm:$0xff] %v723_v1  ;;  %v705_v29 = vadd.f32 %v704_v27, %v703_v22  ;;  %v686_v30 = vrot.slane %v685_v63, 2 }
 0x1e8   : > { %v712_v31 = vrot.slane %v711_v5, 1  ;;  %v679_v7 = vadd.f32 %v1029_v26, %v678_v28 }
 0x1e9   : > { %v706_v32 = vrot.slane %v705_v29, 1  ;;  %v687_v33 = vadd.f32 %v686_v30, %v685_v63 }
 0x1ea   : > { %v713_v34 = vadd.f32 %v712_v31, %v711_v5  ;;  %v680_v36 = vrot.slane %v679_v7, 2 }
 0x1eb   : > { %v707_v37 = vadd.f32 %v706_v32, %v705_v29  ;;  %v688_v35 = vrot.slane %v687_v33, 1 }
 0x1ec   : > { %1030 = vrcp.f32 %v713_v34  ;;  %v681_v39 = vadd.f32 %v680_v36, %v679_v7 }
 0x1ed   : > { %1032 = vrcp.f32 %v707_v37  ;;  %v689_v52 = vadd.f32 %v688_v35, %v687_v33 }
 0x1ee   : > { %v682_v41 = vrot.slane %v681_v39, 1 }
 0x1ef   : > { %1034 = vrcp.f32 %v689_v52 }
 0x1f0   : > { %v683_v43 = vadd.f32 %v682_v41, %v681_v39 }
 0x1f2   : > { %1036 = vrcp.f32 %v683_v43 }
 0x1f6   : > { %v1031_v44 = vpop.eup %1030 }
 0x1f7   : > { %v1033_v47 = vpop.eup %1032  ;;  %v729_v48 = vmul.f32 %v1031_v44, %v1019_v49 }
 0x1f8   : > { %v727_v38 = vmul.f32 %v1033_v47, %v1021_v18 }
 0x1f9   : > { %v1035_v50 = vpop.eup %1034  ;;  %737 = vst [vmem:[%s1405_s23 + $0x38] sm:$0xff] %v729_v48 }
 0x1fa   : > { %736 = vst [vmem:[%s1405_s23 + $0x30] sm:$0xff] %v727_v38  ;;  %v721_v51 = vmul.f32 %v1035_v50, %v1023_v20 }
 0x1fc   : > { %v1037_v46 = vpop.eup %1036  ;;  %733 = vst [vmem:[%s1405_s23 + $0x18] sm:$0xff] %v721_v51 }
 0x1fd   : > { %v719_v53 = vmul.f32 %v1037_v46, %v1029_v26 }
 0x1ff   : > { %732 = vst [vmem:[%s1405_s23 + $0x10] sm:$0xff] %v719_v53 }
 0x200   : > { %1051 = shalt.err (!%p1048_p3)
}
 0x201   : > { %s1052_s12 = scalar_lea.hbm %s1419_s7, 1024  ;;  %s1056_s15 = scalar_lea.hbm %s1472_s5, 2048 }
 0x202   : > { %p1053_p4 = scmp.ne.s32.totalorder %s1419_s7, %s1052_s12  ;;  %p1057_p9 = scmp.lt.u32.totalorder %s1419_s7, %s1472_s5 }
 0x203   : > { %p1058_p10 = scmp.lt.u32.totalorder %s1056_s15, %s1052_s12  ;;  %p1060_p12 = scmp.lt.u32.totalorder %s1052_s12, %s1419_s7 }
 0x204   : > { %p1054_p7 = pnand %p1053_p4, %p1177_p5 }
 0x205   : > { %p1059_p11 = por %p1058_p10, %p1057_p9 }
 0x206   : > { %p1055_p8 = pneg %p1054_p7 }
 0x207   : > { %p1061_p13 = por %p1060_p12, %p1059_p11 }
 0x209   : > { %p1062_p0 = pnand %p1061_p13, %p1055_p8 }
 0x20b   : > { %1065 = shalt.err (!%p1062_p0)
}
 0x20c   : > { %s1107_s23 = smov 128   ;;  %s1108_s25 = smov 8  }
 0x20d   : > { %945 = dma.vmem_to_hbm [thread:$0]  (%p1177_p5), %s1421_s26, 1024, %s1419_s7, %s1426_s8, %s1107_s23, %s1107_s23, %s1108_s25  }
 0x20e PF: > { %p951_p1 = scmp.ge.s32.totalorder %s1100_s21, 2  ;;  %s767_s30 = sand.u32 1, %s1088_s18  }
 0x20f   : > { %s768_s6 = scalar_lea.sflag [#allocation3], %s767_s30 }
 0x210   : > { %p948_p2 = pnand %p951_p1, %p1181_p6 }
 0x212   : > { %1083 = dma.done.wait (!%p948_p2), %s768_s6, 1024  }
 0x213   : > { %1085 = vsyncadd (!%p948_p2), %s768_s6, 4294966272  ;;  %p15_p3 = scmp.ge.s32.totalorder %s1164_s24, 4   ;;  %s1475_s18 = smov %s1092_s19 }
 0x214   : > { %s1476_s19 = smov %s1096_s20  ;;  %s1477_s20 = smov %s1175_s27 }
 0x215   : > { %s1478_s21 = smov %s1164_s24  ;;  %17 = sbr.rel (!%p15_p3) target bundleno = 3 (0x3), region = 75 }
 0x21c   :  { %773 = vsyncpa [#allocation3], 1 }
 0x21d   :  { %775 = vsyncpa [#allocation3 + $0x1], 1 }

</bundles_post_ra>
